<compile_context>
chip_gen: v5e
topology: v5e:2x2
jax: 0.10.0
libtpu: 0.0.40
codegen_flags: <defaults>
</compile_context>

<pallas_src>
import jax
import jax.numpy as jnp
from jax.experimental import pallas as pl
from jax.experimental.pallas import tpu as pltpu

_ACTIVATIONS = {
    "relu": lambda x: jnp.maximum(x, 0.0),
    "tanh": jnp.tanh,
    "sigmoid": jax.nn.sigmoid,
    "elu": jax.nn.elu,
    "leaky_relu": jax.nn.leaky_relu,
}


def _pick_group(batch, n_nodes, target_rows):
    """Largest graph-pack factor G dividing `batch` with G*N <= target_rows.

    Prefers choices that leave >=2 grid steps so v7x's second TensorCore
    gets work via the "parallel" grid axis.
    """
    divisors = [g for g in range(1, batch + 1)
                if batch % g == 0 and g * n_nodes <= target_rows]
    if not divisors:
        return 1
    multi_step = [g for g in divisors if batch // g >= 2]
    return max(multi_step) if multi_step else max(divisors)


def _block_diag_groups(a, group):
    """(B, N, N) -> (B//group, group*N, group*N) block-diagonal slabs."""
    b, n, _ = a.shape
    ng = b // group
    a = a.reshape(ng, group, n, n)
    eye = jnp.eye(group, dtype=a.dtype)
    bd = jnp.einsum("bgnm,gh->bgnhm", a, eye)
    return bd.reshape(ng, group * n, group * n)


# ----------------------------------------------------------------------------
# Fused kernel: whole Sequential forward in one pallas_call (feature-major).
# ----------------------------------------------------------------------------
def _make_fused_kernel(plan, n_layers):
    """plan: list of ("d", None) / ("a", activation_fn) in execution order.

    Ref order: a_bd_t, x_t, w_in_t, b_in_c, (w_t_i, b_c_i) * n_layers, o_ref.
    All arrays are presented feature-major (features on sublanes, the packed
    G*N node axis on lanes) so every matmul / store is lane-dense.
    """

    def kernel(*refs):
        a_ref, x_ref, w_in_ref, b_in_ref = refs[:4]
        layer_refs = refs[4:4 + 2 * n_layers]
        o_ref = refs[4 + 2 * n_layers]

        a_t = a_ref[0]          # (GN, GN) bf16 — transposed block-diag adjacency
        x_t = x_ref[...]        # (F, GN)  bf16 — node features, feature-major

        # f_in: h = tanh(x @ W_in + b_in), computed transposed:
        #   h.T = tanh(W_in.T @ x.T + b_in.T)
        ht = jnp.tanh(
            jnp.dot(w_in_ref[...], x_t, preferred_element_type=jnp.float32)
            + b_in_ref[...]
        )                        # (input_units, GN) f32

        li = 0
        for kind, payload in plan:
            if kind == "d":
                w_t = layer_refs[2 * li][...]        # (d_out, d_in) bf16
                b_c = layer_refs[2 * li + 1][...]    # (d_out, 1)    f32
                # GCN layer, reassociated: h' = A @ (h @ W) + b, transposed:
                #   h'.T = (W.T @ h.T) @ A.T + b.T
                hw = jnp.dot(w_t, ht.astype(jnp.bfloat16),
                             preferred_element_type=jnp.float32)     # (d_out, GN)
                ht = jnp.dot(hw.astype(jnp.bfloat16), a_t,
                             preferred_element_type=jnp.float32) + b_c
                li += 1
            else:                # activation / dropout-identity, in-register
                ht = payload(ht)

        o_ref[...] = ht.astype(o_ref.dtype)          # (out_dim, GN) lane-dense

    return kernel


def _cost_estimate(args, out_shape, plan, layer_params, batch, n_nodes, group,
                   feat, in_units):
    gn = group * n_nodes
    ng = batch // group
    flops = 2 * batch * n_nodes * feat * in_units
    transcendentals = batch * n_nodes * in_units     # tanh in f_in
    dim = in_units
    li = 0
    for kind, _ in plan:
        if kind == "d":
            d_out, d_in = layer_params[li][0].shape
            flops += ng * (2 * gn * d_in * d_out + 2 * gn * gn * d_out)
            dim = d_out
            li += 1
        else:
            transcendentals += batch * n_nodes * dim
    bytes_accessed = sum(int(a.size) * a.dtype.itemsize for a in args)
    osz = 1
    for d in out_shape.shape:
        osz *= int(d)
    bytes_accessed += osz * out_shape.dtype.itemsize
    return pl.CostEstimate(flops=int(flops),
                           transcendentals=int(transcendentals),
                           bytes_accessed=int(bytes_accessed))


def fused_sequential_forward(a_norm, x, w_in_t, b_in_c, layer_params, plan,
                             out_dim, group):
    """a_norm: (B, N, N) f32; x: (B, N, F) f32. Returns (B, N, out_dim) f32."""
    batch, n_nodes, feat = x.shape
    assert batch % group == 0
    ng = batch // group
    gn = group * n_nodes

    # bf16 operands for the MXU (f32 accumulation inside the kernel); the
    # adjacency is packed into one block-diagonal slab per group, transposed
    # for the feature-major formulation.
    a_bd_t = _block_diag_groups(
        jnp.swapaxes(a_norm, -1, -2).astype(jnp.bfloat16), group)   # (ng, GN, GN)
    x_t = x.reshape(batch * n_nodes, feat).T.astype(jnp.bfloat16)   # (F, B*N)

    kernel = _make_fused_kernel(plan, len(layer_params))

    in_specs = [
        pl.BlockSpec((1, gn, gn), lambda i: (i, 0, 0)),
        pl.BlockSpec((feat, gn), lambda i: (0, i)),
        pl.BlockSpec(w_in_t.shape, lambda i: (0, 0)),
        pl.BlockSpec(b_in_c.shape, lambda i: (0, 0)),
    ]
    args = [a_bd_t, x_t, w_in_t, b_in_c]
    for w_t, b_c in layer_params:
        in_specs.append(pl.BlockSpec(w_t.shape, lambda i: (0, 0)))
        in_specs.append(pl.BlockSpec(b_c.shape, lambda i: (0, 0)))
        args.extend((w_t, b_c))

    out_shape = jax.ShapeDtypeStruct((out_dim, batch * n_nodes), jnp.float32)
    cost = _cost_estimate(args, out_shape, plan, layer_params, batch, n_nodes,
                          group, feat, w_in_t.shape[0])

    out_t = pl.pallas_call(
        kernel,
        out_shape=out_shape,
        grid=(ng,),
        in_specs=in_specs,
        out_specs=pl.BlockSpec((out_dim, gn), lambda i: (0, i)),
        compiler_params=pltpu.CompilerParams(
            dimension_semantics=("parallel",),
        ),
        cost_estimate=cost,
    )(*args)

    # (out_dim, B*N) -> (B, N, out_dim): cheap wrapper-side layout plumbing.
    return out_t.T.reshape(batch, n_nodes, out_dim)


# ----------------------------------------------------------------------------
# Sequential model (parameter setup + config parsing are plain-Python glue).
# ----------------------------------------------------------------------------
class SequentialPallas:
    """Mirrors espaloma Sequential: f_in = Linear(feature_units, input_units)+Tanh,
    then alternating graph-conv layers (ints in `config`) and activations (strs)."""

    def __init__(self, config, feature_units=117, input_units=128, key=None,
                 target_rows=128):
        if key is None:
            key = jax.random.PRNGKey(0)
        self.feature_units = feature_units
        self.input_units = input_units
        # 128 rows/step suits v5e and keeps >=2 parallel steps for v7x; use 256
        # on v6e/v7x when the batch is large enough.
        self.target_rows = target_rows

        key, k_w, k_b = jax.random.split(key, 3)
        scale = 1.0 / float(feature_units) ** 0.5
        w_in = jax.random.uniform(k_w, (feature_units, input_units),
                                  jnp.float32, -scale, scale)
        b_in = jax.random.uniform(k_b, (input_units,), jnp.float32,
                                  -scale, scale)
        # Stored transposed (feature-major) and in bf16 so the kernel feeds the
        # MXU bf16 path directly; biases stay f32 (f32 accumulation).
        self.w_in_t = w_in.T.astype(jnp.bfloat16)      # (input_units, feature_units)
        self.b_in_c = b_in[:, None]                    # (input_units, 1) f32

        # Parse config exactly like _Sequential.__init__ (ints -> layers,
        # strings -> activations; floats (dropout) are identity at inference).
        self.plan = []           # ("d", None) or ("a", activation_fn), in order
        self.layer_params = []   # (W.T bf16, b column f32) per "d" entry
        dim = input_units
        for exe in config:
            try:
                exe_f = float(exe)
                exe = int(exe_f) if exe_f >= 1 else exe_f
            except (TypeError, ValueError):
                pass
            if isinstance(exe, int):
                key, k_w, k_b = jax.random.split(key, 3)
                s = 1.0 / float(dim) ** 0.5
                w = jax.random.uniform(k_w, (dim, exe), jnp.float32, -s, s)
                b = jax.random.uniform(k_b, (exe,), jnp.float32, -s, s)
                self.layer_params.append((w.T.astype(jnp.bfloat16), b[:, None]))
                self.plan.append(("d", None))
                dim = exe
            elif isinstance(exe, str):
                # TODO(synk): 'bn' (BatchNorm1d) not included in this config.
                self.plan.append(("a", _ACTIVATIONS[exe]))
            elif isinstance(exe, float):
                # Dropout: identity at inference time.
                self.plan.append(("a", lambda t: t))
        self.out_dim = dim

    def __call__(self, a_norm, x):
        """a_norm: (N,N) or (B,N,N); x: (N,F) or (B,N,F)."""
        single = x.ndim == 2
        if single:
            a_norm, x = a_norm[None], x[None]
        batch, n_nodes, _ = x.shape
        group = _pick_group(batch, n_nodes, self.target_rows)
        out = fused_sequential_forward(
            a_norm.astype(jnp.float32), x.astype(jnp.float32),
            self.w_in_t, self.b_in_c, self.layer_params, self.plan,
            self.out_dim, group)
        return out[0] if single else out

    def reference(self, a_norm, x):
        """Plain-jnp reference with the same bf16-operand / f32-accumulate recipe."""
        bf16, f32 = jnp.bfloat16, jnp.float32
        a = a_norm.astype(bf16)
        h = jnp.tanh(
            jnp.matmul(x.astype(bf16), self.w_in_t.T,
                       preferred_element_type=f32) + self.b_in_c.T)
        li = 0
        for kind, payload in self.plan:
            if kind == "d":
                w_t, b_c = self.layer_params[li]
                hw = jnp.matmul(h.astype(bf16), w_t.T, preferred_element_type=f32)
                h = jnp.matmul(a, hw.astype(bf16), preferred_element_type=f32) + b_c.T
                li += 1
            else:
                h = payload(h)
        return h


def build_normalized_adjacency_batch(key, batch, n_nodes):
    """Random symmetric graphs + self-loops, D^-1/2 (A+I) D^-1/2 normalization."""
    u = jax.random.uniform(key, (batch, n_nodes, n_nodes))
    upper = jnp.triu((u < 0.3).astype(jnp.float32), k=1)
    adj = upper + jnp.swapaxes(upper, -1, -2) + jnp.eye(n_nodes, dtype=jnp.float32)[None]
    deg = jnp.sum(adj, axis=-1)
    d_inv_sqrt = 1.0 / jnp.sqrt(deg)
    return adj * d_inv_sqrt[..., :, None] * d_inv_sqrt[..., None, :]


if __name__ == "__main__":
    N_NODES = 16
    FEATURE_UNITS = 117
    INPUT_UNITS = 128
    N_GRAPHS = 16                      # packed 8 graphs/step -> grid of 2 steps
    CONFIG = [32, "relu", 32, "relu", 32, "tanh"]

    key = jax.random.PRNGKey(0)
    k_x, k_adj, k_params = jax.random.split(key, 3)

    x = jax.random.normal(k_x, (N_GRAPHS, N_NODES, FEATURE_UNITS), jnp.float32)
    a_norm = build_normalized_adjacency_batch(k_adj, N_GRAPHS, N_NODES)

    model = SequentialPallas(CONFIG, feature_units=FEATURE_UNITS,
                             input_units=INPUT_UNITS, key=k_params)

    out = model(a_norm, x)
    out = jax.block_until_ready(out)

    assert out.shape == (N_GRAPHS, N_NODES, 32), out.shape
    assert out.dtype == jnp.float32
    assert bool(jnp.all(jnp.isfinite(out)))

    # Cross-check against a plain-jnp reference using the same bf16/f32 recipe.
    ref = model.reference(a_norm, x)
    assert bool(jnp.allclose(out, ref, rtol=1e-2, atol=1e-2)), float(
        jnp.max(jnp.abs(out - ref)))

    # Single-graph path (original forward semantics, batch of 1).
    out1 = jax.block_until_ready(model(a_norm[0], x[0]))
    assert out1.shape == (N_NODES, 32), out1.shape
    assert bool(jnp.allclose(out1, ref[0], rtol=1e-2, atol=1e-2))

    print("KERNEL_OK")
</pallas_src>

<mosaic_0001>
module attributes {stable_mosaic.version = 11 : i64} {
  func.func @kernel(%arg0: i32, %arg1: memref<1x128x128xbf16, #tpu.memory_space<vmem>>, %arg2: memref<117x128xbf16, #tpu.memory_space<vmem>>, %arg3: memref<128x117xbf16, #tpu.memory_space<vmem>>, %arg4: memref<128x1xf32, #tpu.memory_space<vmem>>, %arg5: memref<32x128xbf16, #tpu.memory_space<vmem>>, %arg6: memref<32x1xf32, #tpu.memory_space<vmem>>, %arg7: memref<32x32xbf16, #tpu.memory_space<vmem>>, %arg8: memref<32x1xf32, #tpu.memory_space<vmem>>, %arg9: memref<32x32xbf16, #tpu.memory_space<vmem>>, %arg10: memref<32x1xf32, #tpu.memory_space<vmem>>, %arg11: memref<32x128xf32, #tpu.memory_space<vmem>>) attributes {dimension_semantics = [#tpu.dimension_semantics<parallel>], iteration_bounds = array<i64: 2>, scalar_prefetch = 0 : i64, scratch_operands = 0 : i64, tpu.core_type = #tpu.core_type<tc>, window_params = [{transform_indices = @transform_0, window_bounds = array<i64: 1, 128, 128>}, {transform_indices = @transform_1, window_bounds = array<i64: 117, 128>}, {pipeline_mode = #tpu.pipeline_mode<synchronous>, transform_indices = @transform_2, window_bounds = array<i64: 128, 117>}, {pipeline_mode = #tpu.pipeline_mode<synchronous>, transform_indices = @transform_3, window_bounds = array<i64: 128, 1>}, {pipeline_mode = #tpu.pipeline_mode<synchronous>, transform_indices = @transform_4, window_bounds = array<i64: 32, 128>}, {pipeline_mode = #tpu.pipeline_mode<synchronous>, transform_indices = @transform_5, window_bounds = array<i64: 32, 1>}, {pipeline_mode = #tpu.pipeline_mode<synchronous>, transform_indices = @transform_6, window_bounds = array<i64: 32, 32>}, {pipeline_mode = #tpu.pipeline_mode<synchronous>, transform_indices = @transform_7, window_bounds = array<i64: 32, 1>}, {pipeline_mode = #tpu.pipeline_mode<synchronous>, transform_indices = @transform_8, window_bounds = array<i64: 32, 32>}, {pipeline_mode = #tpu.pipeline_mode<synchronous>, transform_indices = @transform_9, window_bounds = array<i64: 32, 1>}, {transform_indices = @transform_10, window_bounds = array<i64: 32, 128>}]} {
    %c0 = arith.constant 0 : index
    %c0_0 = arith.constant 0 : index
    %c0_1 = arith.constant 0 : index
    %0 = vector.load %arg1[%c0, %c0_0, %c0_1] : memref<1x128x128xbf16, #tpu.memory_space<vmem>>, vector<1x128x128xbf16>
    %1 = vector.shape_cast %0 : vector<1x128x128xbf16> to vector<128x128xbf16>
    %c0_2 = arith.constant 0 : index
    %c0_3 = arith.constant 0 : index
    %2 = vector.load %arg2[%c0_2, %c0_3] : memref<117x128xbf16, #tpu.memory_space<vmem>>, vector<117x128xbf16>
    %c0_4 = arith.constant 0 : index
    %c0_5 = arith.constant 0 : index
    %3 = vector.load %arg3[%c0_4, %c0_5] : memref<128x117xbf16, #tpu.memory_space<vmem>>, vector<128x117xbf16>
    %cst = arith.constant dense<0.000000e+00> : vector<128x128xf32>
    %4 = tpu.matmul %3, %2, %cst {dimension_numbers = #tpu.dot_dimension_numbers<[1], [0], [0], [1], [0, 0, 1, 1], [], []>} : vector<128x117xbf16>, vector<117x128xbf16>, vector<128x128xf32> -> vector<128x128xf32>
    %c0_6 = arith.constant 0 : index
    %c0_7 = arith.constant 0 : index
    %5 = vector.load %arg4[%c0_6, %c0_7] : memref<128x1xf32, #tpu.memory_space<vmem>>, vector<128x1xf32>
    %6 = vector.broadcast %5 : vector<128x1xf32> to vector<128x128xf32>
    %7 = arith.addf %4, %6 : vector<128x128xf32>
    %8 = math.tanh %7 : vector<128x128xf32>
    %c0_8 = arith.constant 0 : index
    %c0_9 = arith.constant 0 : index
    %9 = vector.load %arg5[%c0_8, %c0_9] : memref<32x128xbf16, #tpu.memory_space<vmem>>, vector<32x128xbf16>
    %c0_10 = arith.constant 0 : index
    %c0_11 = arith.constant 0 : index
    %10 = vector.load %arg6[%c0_10, %c0_11] : memref<32x1xf32, #tpu.memory_space<vmem>>, vector<32x1xf32>
    %11 = arith.truncf %8 : vector<128x128xf32> to vector<128x128xbf16>
    %cst_12 = arith.constant dense<0.000000e+00> : vector<32x128xf32>
    %12 = tpu.matmul %9, %11, %cst_12 {dimension_numbers = #tpu.dot_dimension_numbers<[1], [0], [0], [1], [0, 0, 1, 1], [], []>} : vector<32x128xbf16>, vector<128x128xbf16>, vector<32x128xf32> -> vector<32x128xf32>
    %13 = arith.truncf %12 : vector<32x128xf32> to vector<32x128xbf16>
    %cst_13 = arith.constant dense<0.000000e+00> : vector<32x128xf32>
    %14 = tpu.matmul %13, %1, %cst_13 {dimension_numbers = #tpu.dot_dimension_numbers<[1], [0], [0], [1], [0, 0, 1, 1], [], []>} : vector<32x128xbf16>, vector<128x128xbf16>, vector<32x128xf32> -> vector<32x128xf32>
    %15 = vector.broadcast %10 : vector<32x1xf32> to vector<32x128xf32>
    %16 = arith.addf %14, %15 : vector<32x128xf32>
    %cst_14 = arith.constant 0.000000e+00 : f32
    %17 = vector.broadcast %cst_14 : f32 to vector<32x128xf32>
    %18 = arith.maximumf %16, %17 : vector<32x128xf32>
    %c0_15 = arith.constant 0 : index
    %c0_16 = arith.constant 0 : index
    %19 = vector.load %arg7[%c0_15, %c0_16] : memref<32x32xbf16, #tpu.memory_space<vmem>>, vector<32x32xbf16>
    %c0_17 = arith.constant 0 : index
    %c0_18 = arith.constant 0 : index
    %20 = vector.load %arg8[%c0_17, %c0_18] : memref<32x1xf32, #tpu.memory_space<vmem>>, vector<32x1xf32>
    %21 = arith.truncf %18 : vector<32x128xf32> to vector<32x128xbf16>
    %cst_19 = arith.constant dense<0.000000e+00> : vector<32x128xf32>
    %22 = tpu.matmul %19, %21, %cst_19 {dimension_numbers = #tpu.dot_dimension_numbers<[1], [0], [0], [1], [0, 0, 1, 1], [], []>} : vector<32x32xbf16>, vector<32x128xbf16>, vector<32x128xf32> -> vector<32x128xf32>
    %23 = arith.truncf %22 : vector<32x128xf32> to vector<32x128xbf16>
    %cst_20 = arith.constant dense<0.000000e+00> : vector<32x128xf32>
    %24 = tpu.matmul %23, %1, %cst_20 {dimension_numbers = #tpu.dot_dimension_numbers<[1], [0], [0], [1], [0, 0, 1, 1], [], []>} : vector<32x128xbf16>, vector<128x128xbf16>, vector<32x128xf32> -> vector<32x128xf32>
    %25 = vector.broadcast %20 : vector<32x1xf32> to vector<32x128xf32>
    %26 = arith.addf %24, %25 : vector<32x128xf32>
    %cst_21 = arith.constant 0.000000e+00 : f32
    %27 = vector.broadcast %cst_21 : f32 to vector<32x128xf32>
    %28 = arith.maximumf %26, %27 : vector<32x128xf32>
    %c0_22 = arith.constant 0 : index
    %c0_23 = arith.constant 0 : index
    %29 = vector.load %arg9[%c0_22, %c0_23] : memref<32x32xbf16, #tpu.memory_space<vmem>>, vector<32x32xbf16>
    %c0_24 = arith.constant 0 : index
    %c0_25 = arith.constant 0 : index
    %30 = vector.load %arg10[%c0_24, %c0_25] : memref<32x1xf32, #tpu.memory_space<vmem>>, vector<32x1xf32>
    %31 = arith.truncf %28 : vector<32x128xf32> to vector<32x128xbf16>
    %cst_26 = arith.constant dense<0.000000e+00> : vector<32x128xf32>
    %32 = tpu.matmul %29, %31, %cst_26 {dimension_numbers = #tpu.dot_dimension_numbers<[1], [0], [0], [1], [0, 0, 1, 1], [], []>} : vector<32x32xbf16>, vector<32x128xbf16>, vector<32x128xf32> -> vector<32x128xf32>
    %33 = arith.truncf %32 : vector<32x128xf32> to vector<32x128xbf16>
    %cst_27 = arith.constant dense<0.000000e+00> : vector<32x128xf32>
    %34 = tpu.matmul %33, %1, %cst_27 {dimension_numbers = #tpu.dot_dimension_numbers<[1], [0], [0], [1], [0, 0, 1, 1], [], []>} : vector<32x128xbf16>, vector<128x128xbf16>, vector<32x128xf32> -> vector<32x128xf32>
    %35 = vector.broadcast %30 : vector<32x1xf32> to vector<32x128xf32>
    %36 = arith.addf %34, %35 : vector<32x128xf32>
    %37 = math.tanh %36 : vector<32x128xf32>
    %c0_28 = arith.constant 0 : index
    %c0_29 = arith.constant 0 : index
    %38 = vector.load %arg11[%c0_28, %c0_29] : memref<32x128xf32, #tpu.memory_space<vmem>>, vector<32x128xf32>
    tpu.vector_store %arg11[%c0_28, %c0_29], %37 {strides = array<i32>} : memref<32x128xf32, #tpu.memory_space<vmem>>, vector<32x128xf32>,
    return
  }
  func.func @transform_0(%arg0: i32) -> (i32, i32, i32) {
    %c0_i32 = arith.constant 0 : i32
    %c0_i32_0 = arith.constant 0 : i32
    %c0_i32_1 = arith.constant 0 : i32
    return %arg0, %c0_i32, %c0_i32_0 : i32, i32, i32
  }
  func.func @transform_1(%arg0: i32) -> (i32, i32) {
    %c0_i32 = arith.constant 0 : i32
    %c0_i32_0 = arith.constant 0 : i32
    return %c0_i32, %arg0 : i32, i32
  }
  func.func @transform_2(%arg0: i32) -> (i32, i32) {
    %c0_i32 = arith.constant 0 : i32
    %c0_i32_0 = arith.constant 0 : i32
    %c0_i32_1 = arith.constant 0 : i32
    return %c0_i32, %c0_i32_0 : i32, i32
  }
  func.func @transform_3(%arg0: i32) -> (i32, i32) {
    %c0_i32 = arith.constant 0 : i32
    %c0_i32_0 = arith.constant 0 : i32
    %c0_i32_1 = arith.constant 0 : i32
    return %c0_i32, %c0_i32_0 : i32, i32
  }
  func.func @transform_4(%arg0: i32) -> (i32, i32) {
    %c0_i32 = arith.constant 0 : i32
    %c0_i32_0 = arith.constant 0 : i32
    %c0_i32_1 = arith.constant 0 : i32
    return %c0_i32, %c0_i32_0 : i32, i32
  }
  func.func @transform_5(%arg0: i32) -> (i32, i32) {
    %c0_i32 = arith.constant 0 : i32
    %c0_i32_0 = arith.constant 0 : i32
    %c0_i32_1 = arith.constant 0 : i32
    return %c0_i32, %c0_i32_0 : i32, i32
  }
  func.func @transform_6(%arg0: i32) -> (i32, i32) {
    %c0_i32 = arith.constant 0 : i32
    %c0_i32_0 = arith.constant 0 : i32
    %c0_i32_1 = arith.constant 0 : i32
    return %c0_i32, %c0_i32_0 : i32, i32
  }
  func.func @transform_7(%arg0: i32) -> (i32, i32) {
    %c0_i32 = arith.constant 0 : i32
    %c0_i32_0 = arith.constant 0 : i32
    %c0_i32_1 = arith.constant 0 : i32
    return %c0_i32, %c0_i32_0 : i32, i32
  }
  func.func @transform_8(%arg0: i32) -> (i32, i32) {
    %c0_i32 = arith.constant 0 : i32
    %c0_i32_0 = arith.constant 0 : i32
    %c0_i32_1 = arith.constant 0 : i32
    return %c0_i32, %c0_i32_0 : i32, i32
  }
  func.func @transform_9(%arg0: i32) -> (i32, i32) {
    %c0_i32 = arith.constant 0 : i32
    %c0_i32_0 = arith.constant 0 : i32
    %c0_i32_1 = arith.constant 0 : i32
    return %c0_i32, %c0_i32_0 : i32, i32
  }
  func.func @transform_10(%arg0: i32) -> (i32, i32) {
    %c0_i32 = arith.constant 0 : i32
    %c0_i32_0 = arith.constant 0 : i32
    return %c0_i32, %arg0 : i32, i32
  }
}

</mosaic_0001>

<bundles_post_ra>
// kernel: tpu_custom_call.1
= control target key start
LH: loop header
LB: loop body
LE: loop exit
PB: predicated region body
PF: predicated region fallthrough
CT: control target
= control target key end

     0   :  { %s1902_s0 = inlined_call_operand.vmem [shape: bf16[2,128,128], index: 0, kind: input, shape index: {}]   ;;  %s1903_s1 = inlined_call_operand.vmem [shape: bf16[117,256], index: 1, kind: input, shape index: {}]   ;;  %s1904_s2 = inlined_call_operand.vmem [shape: bf16[128,117], index: 2, kind: input, shape index: {}]   ;;  %s1905_s3 = inlined_call_operand.vmem [shape: f32[128,1], index: 3, kind: input, shape index: {}]   ;;  %s1906_s4 = inlined_call_operand.vmem [shape: bf16[32,128], index: 4, kind: input, shape index: {}]   ;;  %s1907_s5 = inlined_call_operand.vmem [shape: f32[32,1], index: 5, kind: input, shape index: {}]   ;;  %s1908_s6 = inlined_call_operand.vmem [shape: bf16[32,32], index: 6, kind: input, shape index: {}]   ;;  %s1909_s7 = inlined_call_operand.vmem [shape: f32[32,1], index: 7, kind: input, shape index: {}]   ;;  %s1910_s8 = inlined_call_operand.vmem [shape: bf16[32,32], index: 8, kind: input, shape index: {}]   ;;  %s1911_s9 = inlined_call_operand.vmem [shape: f32[32,1], index: 9, kind: input, shape index: {}]   ;;  %s1912_s10 = inlined_call_operand.hbm [shape: f32[32,256], index: 10, kind: output, shape index: {}]  }
   0x1   :  { %1913 = sst [smem:[#allocation6_spill]] %s1902_s0 }
   0x2   :  { %15 = vsyncpa [#allocation4], 0 }
   0x3   :  { %17 = vsyncpa [#allocation4 + $0x1], 0  ;;  %s1622_s13 = smov 0   ;;  %s1624_s14 = smov 0  }
   0x4   :  { %s1626_s15 = smov 0   ;;  %s1628_s16 = smov 0  }
   0x5 LB: > { %s1643_s17 = sadd.s32 4294967295, %s1560_s16   ;;  %s1223_s18 = sadd.s32 4294967294, %s1560_s16   ;;  %s1560_s16 = sphi %s1628_s16, %s1920_s16   ;;  %s1556_s15 = sphi %s1626_s15, %s1919_s15   ;;  %s1552_s14 = sphi %s1624_s14, %s1918_s14   ;;  %s1548_s13 = sphi %s1622_s13, %s1917_s13  }
   0x6   : > { %s1647_s19 = sadd.s32 1, %s1560_s16   ;;  %s56_s20 = sadd.s32 1, %s1556_s15 }
   0x7   : > { %s53_s21 = ssub.s32 %s1560_s16, %s1647_s19  ;;  %p63_p0 = scmp.ne.s32.totalorder %s1556_s15, %s1552_s14 }
   0x8   : > { %p54_p1 = scmp.eq.s32.totalorder %s53_s21, 0  ;;  %p64_p2 = scmp.eq.s32.totalorder %s1560_s16, 0 }
   0x9   : > { %p261_p3 = scmp.eq.s32.totalorder %s1643_s17, 1  ;;  %p266_p4 = scmp.ne.s32.totalorder %s1552_s14, %s1548_s13 }
   0xa   : > { %s1659_s22 = scalar_select %p54_p1, %s1556_s15, %s56_s20  }
   0xb   : > { %p65_p5 = por %p64_p2, %p63_p0  ;;  %p1661_p6 = por %p261_p3, %p63_p0 }
   0xc   : > { %p267_p7 = scmp.eq.s32.totalorder %s1223_s18, 1  ;;  %p1225_p9 = scmp.ge.s32.totalorder %s1560_s16, 2 }
   0xe   : > { %p1665_p8 = por %p267_p7, %p266_p4  ;;  %307 = sbr.rel (%p1225_p9) target bundleno = 39 (0x27), region = 48 }
  0x13   : > { %318 = sbr.rel (!%p65_p5) target bundleno = 39 (0x27), region = 56  ;;  %s320_s25 = sand.u32 (%p65_p5), 1, %s1556_s15  }
  0x14   : > { %s1226_s26 = sshll.u32 (%p65_p5), %s1560_s16, 2  ;;  %s1409_s27 = smul.u32 (%p65_p5), 60, %s320_s25 }
  0x15   : > { %s324_s30 = scalar_lea.vmem (%p65_p5), %s1903_s1, %s1226_s26 }
  0x16   : > { %v341_v0 = vld [vmem:[%s324_s30] sm:$0xf] (%p65_p5)  ;;  %v343_v1 = vld [vmem:[%s324_s30 + $0x8] sm:$0xf] (%p65_p5)  ;;  %v345_v2 = vld [vmem:[%s324_s30 + $0x10] sm:$0xf] (%p65_p5) }
  0x17   : > { %s322_s11 = scalar_lea.vmem (%p65_p5), [#allocation2], %s1409_s27  ;;  %v347_v3 = vld [vmem:[%s324_s30 + $0x18] sm:$0xf] (%p65_p5)  ;;  %v349_v4 = vld [vmem:[%s324_s30 + $0x20] sm:$0xf] (%p65_p5) }
  0x18   : > { %342 = vst [vmem:[%s322_s11] sm:$0xf] %v341_v0  ;;  %v351_v5 = vld [vmem:[%s324_s30 + $0x28] sm:$0xf]  ;;  %v353_v6 = vld [vmem:[%s324_s30 + $0x30] sm:$0xf] }
  0x19   : > { %344 = vst [vmem:[%s322_s11 + $0x4] sm:$0xf] %v343_v1  ;;  %v355_v7 = vld [vmem:[%s324_s30 + $0x38] sm:$0xf]  ;;  %v357_v8 = vld [vmem:[%s324_s30 + $0x40] sm:$0xf] }
  0x1a   : > { %346 = vst [vmem:[%s322_s11 + $0x8] sm:$0xf] %v345_v2  ;;  %v359_v9 = vld [vmem:[%s324_s30 + $0x48] sm:$0xf]  ;;  %v361_v10 = vld [vmem:[%s324_s30 + $0x50] sm:$0xf] }
  0x1b   : > { %348 = vst [vmem:[%s322_s11 + $0xc] sm:$0xf] %v347_v3  ;;  %v363_v11 = vld [vmem:[%s324_s30 + $0x58] sm:$0xf]  ;;  %v365_v12 = vld [vmem:[%s324_s30 + $0x60] sm:$0xf] }
  0x1c   : > { %350 = vst [vmem:[%s322_s11 + $0x10] sm:$0xf] %v349_v4  ;;  %v367_v13 = vld [vmem:[%s324_s30 + $0x68] sm:$0xf]  ;;  %v369_v14 = vld [vmem:[%s324_s30 + $0x70] sm:$0xf] }
  0x1d   : > { %352 = vst [vmem:[%s322_s11 + $0x14] sm:$0xf] %v351_v5 }
  0x1e   : > { %354 = vst [vmem:[%s322_s11 + $0x18] sm:$0xf] %v353_v6 }
  0x1f   : > { %356 = vst [vmem:[%s322_s11 + $0x1c] sm:$0xf] %v355_v7 }
  0x20   : > { %358 = vst [vmem:[%s322_s11 + $0x20] sm:$0xf] %v357_v8 }
  0x21   : > { %360 = vst [vmem:[%s322_s11 + $0x24] sm:$0xf] %v359_v9 }
  0x22   : > { %362 = vst [vmem:[%s322_s11 + $0x28] sm:$0xf] %v361_v10 }
  0x23   : > { %364 = vst [vmem:[%s322_s11 + $0x2c] sm:$0xf] %v363_v11 }
  0x24   : > { %366 = vst [vmem:[%s322_s11 + $0x30] sm:$0xf] %v365_v12 }
  0x25   : > { %368 = vst [vmem:[%s322_s11 + $0x34] sm:$0xf] %v367_v13 }
  0x26   : > { %370 = vst [vmem:[%s322_s11 + $0x38] sm:$0xf] %v369_v14 }
  0x27 PF: > { %p1227_p10 = scmp.ge.s32.totalorder %s1560_s16, 1  ;;  %p423_p11 = scmp.lt.s32.totalorder %s1560_s16, 3 }
  0x29   : > { %p424_p12 = pnand %p1227_p10, %p423_p11 }
  0x2a   : > { %s1680_s12 = sand.u32 (!%p424_p12), 1, %s1552_s14   ;;  %p472_p13 = scmp.lt.s32.totalorder (!%p424_p12), %s1643_s17, 1 }
  0x2b   : > { %427 = sbr.rel (%p424_p12) target bundleno = 1237 (0x4d5), region = 97  ;;  %s1916_s0 = sld [smem:[#allocation6_spill]] (!%p424_p12) }
  0x2c   : > { %s1410_s21 = smul.u32 (!%p424_p12), 60, %s1680_s12  ;;  %s1228_s26 = sshll.u32 (!%p424_p12), %s1680_s12, 5 }
  0x2d   : > { %s471_s27 = scalar_lea.vmem (!%p424_p12), [#allocation3], %s1228_s26  ;;  %s1360_s28 = sshll.u32 (!%p424_p12), %s1643_s17, 3 }
  0x2e   : > { %s1686_s25 = scalar_lea.vmem (!%p424_p12), [#allocation2], %s1410_s21  ;;  %s1139_s30 = scalar_lea.hbm (!%p424_p12), %s1912_s10, %s1360_s28 }
  0x2f   : > { %s1140_s11 = sshll.u32 (!%p424_p12), %s471_s27, 4  ;;  %s1129_s20 = scalar_lea.sflag (!%p424_p12), [#allocation4], %s1680_s12  ;;  %s1141_s11 = int_to_ptr.vmem [resolvable:$true] %s1140_s11 }
  0x30   : > { %vm731_vm0 = vcmask 1041408   ;;  %v539_v15 = vld [vmem:[%s1905_s3 + $0x70] sm:$0xff]  ;;  %v1562_v16 = vmov 0   ;;  %vm732_vm1 = vcmask 1042432   ;;  %v1563_v17 = vmov 65535   ;;  %v540_v23 = vld [vmem:[%s1905_s3 + $0x78] sm:$0xff] }
  0x31   : > { %1455 = vset.pattern.permute.xlu0 %v1562_v16  ;;  %1456 = vset.pattern.permute.xlu1 %v1562_v16  ;;  %v733_v18 = vsel %vm731_vm0, 4294967295, %v1563_v17  ;;  %v508_v19 = vld [vmem:[%s1686_s25 + $0x38] sm:$0x7]  ;;  %v537_v24 = vld [vmem:[%s1905_s3 + $0x60] sm:$0xff]  ;;  %v1378_v27 = vld [vmem:[%s1686_s25 + $0x30] sm:$0xff]  ;;  %vm706_vm2 = vcmask 957440  }
  0x32   : > { %613 = vperm.xlu0 %1455, %v539_v15   ;;  %1457 = vset.pattern.permute.xlu2 %v1562_v16  ;;  %v690_v20 = vunpack.c.l.b16 %v508_v19  ;;  %v734_v21 = vsel %vm732_vm1, %v733_v18, 0  ;;  %v535_v26 = vld [vmem:[%s1905_s3 + $0x50] sm:$0xff]  ;;  %v538_v28 = vld [vmem:[%s1905_s3 + $0x68] sm:$0xff]  ;;  %v533_v30 = vld [vmem:[%s1905_s3 + $0x40] sm:$0xff]  ;;  %s473_s29 = scalar_select %p472_p13, %s1643_s17, 1  ;;  %vm963_vm3 = vcmask 261120  }
  0x33   : > { %603 = vperm.xlu1 %1456, %v537_v24   ;;  %593 = vperm.xlu2 %1457, %v535_v26   ;;  %v1377_v29 = vld [vmem:[%s1686_s25 + $0x28] sm:$0xff]  ;;  %v536_v31 = vld [vmem:[%s1905_s3 + $0x58] sm:$0xff]  ;;  %v531_v36 = vld [vmem:[%s1905_s3 + $0x30] sm:$0xff]  ;;  %s1518_s28 = scalar_lea.hbm %s1912_s10, 64 }
  0x34   : > { %v698_v22 = vpack.c.b16 %v690_v20, %v690_v20  ;;  %v1376_v32 = vld [vmem:[%s1686_s25 + $0x20] sm:$0xff]  ;;  %v534_v33 = vld [vmem:[%s1905_s3 + $0x48] sm:$0xff]  ;;  %v1375_v34 = vld [vmem:[%s1686_s25 + $0x18] sm:$0xff] }
  0x35   : > { %v532_v35 = vld [vmem:[%s1905_s3 + $0x38] sm:$0xff]  ;;  %v1374_v37 = vld [vmem:[%s1686_s25 + $0x10] sm:$0xff]  ;;  %v529_v38 = vld [vmem:[%s1905_s3 + $0x20] sm:$0xff] }
  0x36   : > { %v736_v25 = vand.u32 %v734_v21, %v698_v22  ;;  %v1373_v39 = vld [vmem:[%s1686_s25 + $0x8] sm:$0xff]  ;;  %v527_v40 = vld [vmem:[%s1905_s3 + $0x10] sm:$0xff]  ;;  %v1372_v42 = vld [vmem:[%s1686_s25] sm:$0xff]  ;;  %s1363_s25 = sshll.u32 %s473_s29, 6 }
  0x37   : > { %v530_v41 = vld [vmem:[%s1905_s3 + $0x28] sm:$0xff]  ;;  %v528_v43 = vld [vmem:[%s1905_s3 + $0x18] sm:$0xff]  ;;  %v1379_v44 = vld [vmem:[%s1904_s2] sm:$0xff]  ;;  %s1823_s18 = scalar_lea.vmem %s1916_s0, %s1363_s25 }
  0x38   : > { %738 = vmatpush.bf16.msra.mxu0 %v736_v25  ;;  %1393 = vmatpush.bf16.msra.mxu1 %v736_v25  ;;  %v1384_v45 = vld [vmem:[%s1904_s2 + $0x28] sm:$0xff]  ;;  %v1386_v46 = vld [vmem:[%s1904_s2 + $0x38] sm:$0xff]  ;;  %v525_v48 = vld [vmem:[%s1905_s3] sm:$0xff] }
  0x39   : > { %1394 = vmatpush.bf16.msra.mxu3 %v736_v25  ;;  %v526_v47 = vld [vmem:[%s1905_s3 + $0x8] sm:$0xff]  ;;  %v809_v49 = vld [vmem:[%s1907_s5 + $0x10] sm:$0xff]  ;;  %v807_v50 = vld [vmem:[%s1907_s5] sm:$0xff] }
  0x3a   : > { %618 = vperm.xlu0 %1455, %v540_v23   ;;  %v808_v51 = vld [vmem:[%s1907_s5 + $0x8] sm:$0xff]  ;;  %v1385_v53 = vld [vmem:[%s1904_s2 + $0x30] sm:$0xff]  ;;  %v950_v54 = vld [vmem:[%s1909_s7 + $0x18] sm:$0xff] }
  0x3b   : > { %608 = vperm.xlu1 %1456, %v538_v28   ;;  %598 = vperm.xlu2 %1457, %v536_v31   ;;  %v1380_v52 = vld [vmem:[%s1904_s2 + $0x8] sm:$0xff]  ;;  %v947_v55 = vld [vmem:[%s1909_s7] sm:$0xff]  ;;  %v1381_v58 = vld [vmem:[%s1904_s2 + $0x10] sm:$0xff] }
  0x3c   : > { %739 = vmatpush.bf16.msra.mxu0 %v1378_v27  ;;  %1395 = vmatpush.bf16.msra.mxu1 %v1378_v27  ;;  %v1038_v56 = vld [vmem:[%s1911_s9] sm:$0xff]  ;;  %v1039_v57 = vld [vmem:[%s1911_s9 + $0x8] sm:$0xff]  ;;  %v1041_v59 = vld [vmem:[%s1911_s9 + $0x18] sm:$0xff] }
  0x3d   : > { %1396 = vmatpush.bf16.msra.mxu3 %v1378_v27  ;;  %v810_v60 = vld [vmem:[%s1907_s5 + $0x18] sm:$0xff]  ;;  %v949_v61 = vld [vmem:[%s1909_s7 + $0x10] sm:$0xff]  ;;  %v948_v63 = vld [vmem:[%s1909_s7 + $0x8] sm:$0xff] }
  0x3e   : > { %v1382_v62 = vld [vmem:[%s1904_s2 + $0x18] sm:$0xff]  ;;  %v1040_v0 = vld [vmem:[%s1911_s9 + $0x10] sm:$0xff]  ;;  %v1383_v1 = vld [vmem:[%s1904_s2 + $0x20] sm:$0xff] }
  0x40   : > { %740 = vmatpush.bf16.msra.mxu0 %v1377_v29  ;;  %1397 = vmatpush.bf16.msra.mxu1 %v1377_v29 }
  0x41   : > { %1398 = vmatpush.bf16.msra.mxu3 %v1377_v29 }
  0x42   : > { %583 = vperm.xlu0 %1455, %v533_v30  }
  0x43   : > { %588 = vperm.xlu1 %1456, %v534_v33   ;;  %573 = vperm.xlu2 %1457, %v531_v36  }
  0x44   : > { %741 = vmatpush.bf16.msra.mxu0 %v1376_v32  ;;  %1399 = vmatpush.bf16.msra.mxu1 %v1376_v32 }
  0x45   : > { %1400 = vmatpush.bf16.msra.mxu3 %v1376_v32 }
  0x48   : > { %742 = vmatpush.bf16.msra.mxu0 %v1375_v34  ;;  %1401 = vmatpush.bf16.msra.mxu1 %v1375_v34 }
  0x49   : > { %1402 = vmatpush.bf16.msra.mxu3 %v1375_v34 }
  0x4a   : > { %578 = vperm.xlu0 %1455, %v532_v35  }
  0x4b   : > { %563 = vperm.xlu1 %1456, %v529_v38   ;;  %568 = vperm.xlu2 %1457, %v530_v41  }
  0x4c   : > { %743 = vmatpush.bf16.msra.mxu0 %v1374_v37  ;;  %1403 = vmatpush.bf16.msra.mxu1 %v1374_v37 }
  0x4d   : > { %1404 = vmatpush.bf16.msra.mxu3 %v1374_v37 }
  0x50   : > { %744 = vmatpush.bf16.msra.mxu0 %v1373_v39  ;;  %1405 = vmatpush.bf16.msra.mxu1 %v1373_v39 }
  0x51   : > { %1406 = vmatpush.bf16.msra.mxu3 %v1373_v39 }
  0x52   : > { %553 = vperm.xlu0 %1455, %v527_v40  }
  0x53   : > { %558 = vperm.xlu1 %1456, %v528_v43   ;;  %543 = vperm.xlu2 %1457, %v525_v48  }
  0x54   : > { %745 = vmatpush.bf16.msra.mxu0 %v1372_v42  ;;  %1407 = vmatpush.bf16.msra.mxu1 %v1372_v42 }
  0x55   : > { %1408 = vmatpush.bf16.msra.mxu3 %v1372_v42 }
  0x57   : > { %1291 = vmatmul.msk.bf16.vlgmr.msra.gmra.mxu0 %vm706_vm2, %v1379_v44  ;;  %1296 = vmatmul.msk.bf16.vlgmr.msra.gmra.mxu1 %vm706_vm2, %v1384_v45 }
  0x58   : > { %1298 = vmatmul.msk.bf16.vlgmr.msra.gmra.mxu3 %vm706_vm2, %v1386_v46 }
  0x5a   : > { %548 = vperm.xlu0 %1455, %v526_v47  }
  0x5b   : > { %864 = vperm.xlu1 %1456, %v809_v49   ;;  %869 = vperm.xlu2 %1457, %v810_v60  }
  0x62   : > { %854 = vperm.xlu0 %1455, %v807_v50  }
  0x63   : > { %859 = vperm.xlu1 %1456, %v808_v51   ;;  %1003 = vperm.xlu2 %1457, %v949_v61  }
  0x67   : > { %1292 = vmatmul.msk.bf16.gmra.mxu0 %vm706_vm2, %v1380_v52  ;;  %1297 = vmatmul.msk.bf16.gmra.mxu1 %vm706_vm2, %v1385_v53 }
  0x6a   : > { %1008 = vperm.xlu0 %1455, %v950_v54  }
  0x6b   : > { %993 = vperm.xlu1 %1456, %v947_v55   ;;  %998 = vperm.xlu2 %1457, %v948_v63  }
  0x72   : > { %1083 = vperm.xlu0 %1455, %v1038_v56  }
  0x73   : > { %1088 = vperm.xlu1 %1456, %v1039_v57   ;;  %1093 = vperm.xlu2 %1457, %v1040_v0  }
  0x77   : > { %1293 = vmatmul.msk.bf16.gmra.mxu0 %vm706_vm2, %v1381_v58 }
  0x7a   : > { %1098 = vperm.xlu0 %1455, %v1041_v59  }
  0x87   : > { %1294 = vmatmul.msk.bf16.gmra.mxu0 %vm706_vm2, %v1382_v62 }
  0x8d   : > { %v594_v3 = vpop.permute.xlu2 %593 }
  0x95   : > { %v599_v5 = vpop.permute.xlu2 %598 }
  0x97   : > { %1295 = vmatmul.msk.bf16.gmra.mxu0 %vm706_vm2, %v1383_v1 }
  0x9d   : > { %v574_v7 = vpop.permute.xlu2 %573 }
  0xa4   : > { %v614_v2 = vpop.permute.xlu0 %613 }
  0xa5   : > { %v569_v9 = vpop.permute.xlu2 %568  ;;  %v604_v21 = vpop.permute.xlu1 %603 }
  0xac   : > { %v619_v4 = vpop.permute.xlu0 %618 }
  0xad   : > { %v544_v13 = vpop.permute.xlu2 %543  ;;  %v609_v32 = vpop.permute.xlu1 %608 }
  0xb4   : > { %v584_v6 = vpop.permute.xlu0 %583 }
  0xb5   : > { %v589_v49 = vpop.permute.xlu1 %588 }
  0xbc   : > { %v579_v8 = vpop.permute.xlu0 %578 }
  0xbd   : > { %v564_v51 = vpop.permute.xlu1 %563 }
  0xc4   : > { %v1809_v10 = vpop.permute.xlu0 %553 }
  0xc5   : > { %v559_v60 = vpop.permute.xlu1 %558 }
  0xcc   : > { %v549_v15 = vpop.permute.xlu0 %548 }
  0xd4   : > { %v747_v11 = vpop.f32.mrf.mxu0  ;;  %v772_v12 = vpop.f32.mrf.mxu1 }
  0xd5   : > { %v748_v14 = vadd.f32 %v747_v11, %v544_v13  ;;  %v773_v29 = vadd.f32 %v772_v12, %v594_v3  ;;  %v1369_v11 = vld [vmem:[%s1823_s18 + $0x28] sm:$0xff]  ;;  %v1368_v13 = vld [vmem:[%s1823_s18 + $0x20] sm:$0xff] }
  0xd7   : > { %1458 = vtanh.f32 %v748_v14  ;;  %v1387_v14 = vld [vmem:[%s1906_s4] sm:$0xff] }
  0xdb   : > { %v782_v16 = vpop.f32.mrf.mxu3 }
  0xdc   : > { %v749_v17 = vpop.f32.mrf.mxu0  ;;  %v774_v18 = vpop.f32.mrf.mxu1  ;;  %v783_v20 = vadd.f32 %v782_v16, %v614_v2  ;;  %v1388_v16 = vld [vmem:[%s1906_s4 + $0x8] sm:$0xff] }
  0xdd   : > { %v750_v19 = vadd.f32 %v749_v17, %v549_v15  ;;  %v1811_v23 = vpop.eup %1458  ;;  %v775_v33 = vadd.f32 %v774_v18, %v599_v5  ;;  %v1826_v5 = vld [vmem:[%s1823_s18 + $0x38] sm:$0xff]  ;;  %v1366_v17 = vld [vmem:[%s1823_s18 + $0x10] sm:$0xff]  ;;  %v1365_v18 = vld [vmem:[%s1823_s18 + $0x8] sm:$0xff] }
  0xde   : > { %920 = vmatpush.bf16.msra.mxu2 %v1826_v5  ;;  %v1367_v15 = vld [vmem:[%s1823_s18 + $0x18] sm:$0xff] }
  0xdf   : > { %1460 = vtanh.f32 %v750_v19  ;;  %v1364_v19 = vld [vmem:[%s1823_s18] sm:$0xff] }
  0xe0   : > { %1462 = vtanh.f32 %v783_v20 }
  0xe3   : > { %v784_v22 = vpop.f32.mrf.mxu3 }
  0xe4   : > { %v752_v24 = vpop.f32.mrf.mxu0  ;;  %v777_v25 = vpop.f32.mrf.mxu1  ;;  %v785_v26 = vadd.f32 %v784_v22, %v619_v4 }
  0xe5   : > { %v1813_v27 = vpop.eup %1460  ;;  %v778_v31 = vadd.f32 %v777_v25, %v604_v21  ;;  %v753_v1 = vadd.f32 %v752_v24, %v1809_v10 }
  0xe6   : > { %1464 = vtanh.f32 %v785_v26  ;;  %v811_v28 = vpack.c.bf16 %v1813_v27, %v1811_v23  ;;  %v1463_v30 = vpop.eup %1462 }
  0xe7   : > { %1466 = vtanh.f32 %v773_v29 }
  0xe8   : > { %1468 = vtanh.f32 %v778_v31 }
  0xe9   : > { %1470 = vtanh.f32 %v775_v33 }
  0xec   : > { %v1465_v34 = vpop.eup %1464  ;;  %v754_v35 = vpop.f32.mrf.mxu0 }
  0xed   : > { %v779_v36 = vpop.f32.mrf.mxu1  ;;  %v818_v38 = vpack.c.bf16 %v1465_v34, %v1463_v30  ;;  %v1467_v39 = vpop.eup %1466  ;;  %v755_v62 = vadd.f32 %v754_v35, %v559_v60 }
  0xee   : > { %v780_v37 = vadd.f32 %v779_v36, %v609_v32  ;;  %v1469_v40 = vpop.eup %1468  ;;  %v870_v30 = vpop.permute.xlu2 %869 }
  0xef   : > { %831 = vmatpush.bf16.msrb.mxu1 %v818_v38  ;;  %v1471_v42 = vpop.eup %1470  ;;  %v855_v36 = vpop.permute.xlu0 %854 }
  0xf0   : > { %1472 = vtanh.f32 %v780_v37  ;;  %v816_v45 = vpack.c.bf16 %v1471_v42, %v1467_v39 }
  0xf4   : > { %v757_v41 = vpop.f32.mrf.mxu0 }
  0xf5   : > { %v758_v58 = vadd.f32 %v757_v41, %v564_v51 }
  0xf6   : > { %v1473_v43 = vpop.eup %1472 }
  0xf7   : > { %v817_v44 = vpack.c.bf16 %v1473_v43, %v1469_v40 }
  0xf9   : > { %832 = vmatpush.bf16.msrb.mxu1 %v817_v44  ;;  %v1389_v44 = vld [vmem:[%s1908_s6] sm:$0xff] }
  0xfc   : > { %v759_v46 = vpop.f32.mrf.mxu0 }
  0xfd   : > { %833 = vmatpush.bf16.msrb.mxu1 %v816_v45  ;;  %v760_v57 = vadd.f32 %v759_v46, %v569_v9  ;;  %v1390_v45 = vld [vmem:[%s1908_s6 + $0x8] sm:$0xff] }
 0x104   : > { %v762_v47 = vpop.f32.mrf.mxu0 }
 0x105   : > { %v763_v56 = vadd.f32 %v762_v47, %v574_v7  ;;  %v1830_v7 = vld [vmem:[%s1823_s18 + $0x30] sm:$0xff]  ;;  %s1142_s18 = sshll.u32 %s1139_s30, 4  ;;  %s1143_s18 = int_to_ptr.hbm [resolvable:$true] %s1142_s18 }
 0x106   : > { %921 = vmatpush.bf16.msra.mxu2 %v1830_v7  ;;  %s1512_s21 = sshra.s32 %s1143_s18, 4  ;;  %s1513_s21 = int_to_ptr.hbm [resolvable:$true] %s1512_s21 }
 0x107   : > { %s1514_s17 = scalar_lea.hbm %s1513_s21, 32  ;;  %p1519_p3 = scmp.lt.s32.totalorder %s1513_s21, %s1912_s10 }
 0x108   : > { %p1515_p0 = scmp.ne.s32.totalorder %s1513_s21, %s1514_s17  ;;  %p1520_p4 = scmp.lt.s32.totalorder %s1518_s28, %s1514_s17 }
 0x10a   : > { %922 = vmatpush.bf16.msra.mxu2 %v1369_v11  ;;  %p1516_p1 = pnand %p1515_p0, %p1661_p6  ;;  %p1521_p5 = por %p1520_p4, %p1519_p3 }
 0x10c   : > { %v764_v48 = vpop.f32.mrf.mxu0  ;;  %p1517_p2 = pneg %p1516_p1 }
 0x10d   : > { %v765_v54 = vadd.f32 %v764_v48, %v579_v8 }
 0x10e   : > { %923 = vmatpush.bf16.msra.mxu2 %v1368_v13  ;;  %p1522_p7 = pnand %p1521_p5, %p1517_p2 }
 0x112   : > { %924 = vmatpush.bf16.msra.mxu2 %v1367_v15 }
 0x114   : > { %v767_v50 = vpop.f32.mrf.mxu0 }
 0x115   : > { %v768_v52 = vadd.f32 %v767_v50, %v584_v6 }
 0x116   : > { %925 = vmatpush.bf16.msra.mxu2 %v1366_v17 }
 0x117   : > { %1474 = vtanh.f32 %v768_v52 }
 0x11a   : > { %926 = vmatpush.bf16.msra.mxu2 %v1365_v18 }
 0x11c   : > { %v769_v53 = vpop.f32.mrf.mxu0 }
 0x11d   : > { %v770_v55 = vadd.f32 %v769_v53, %v589_v49  ;;  %v1475_v59 = vpop.eup %1474 }
 0x11e   : > { %927 = vmatpush.bf16.msra.mxu2 %v1364_v19 }
 0x11f   : > { %1476 = vtanh.f32 %v770_v55 }
 0x120   : > { %1478 = vtanh.f32 %v765_v54  ;;  %v1004_v54 = vpop.permute.xlu2 %1003 }
 0x121   : > { %1480 = vtanh.f32 %v763_v56  ;;  %v1009_v56 = vpop.permute.xlu0 %1008 }
 0x122   : > { %1482 = vtanh.f32 %v760_v57  ;;  %1101 = vmatpush.bf16.msrb.mxu2 %v1826_v5 }
 0x123   : > { %1484 = vtanh.f32 %v758_v58 }
 0x124   : > { %1486 = vtanh.f32 %v755_v62 }
 0x125   : > { %v1477_v61 = vpop.eup %1476  ;;  %1488 = vtanh.f32 %v753_v1 }
 0x126   : > { %v815_v63 = vpack.c.bf16 %v1477_v61, %v1475_v59  ;;  %v1479_v0 = vpop.eup %1478  ;;  %1102 = vmatpush.bf16.msrb.mxu2 %v1830_v7 }
 0x127   : > { %v1481_v2 = vpop.eup %1480 }
 0x128   : > { %834 = vmatpush.bf16.msrb.mxu1 %v815_v63  ;;  %v814_v3 = vpack.c.bf16 %v1479_v0, %v1481_v2  ;;  %v1483_v4 = vpop.eup %1482  ;;  %v999_v58 = vpop.permute.xlu2 %998 }
 0x129   : > { %v1485_v6 = vpop.eup %1484 }
 0x12a   : > { %v813_v8 = vpack.c.bf16 %v1483_v4, %v1485_v6  ;;  %v1487_v9 = vpop.eup %1486  ;;  %1103 = vmatpush.bf16.msrb.mxu2 %v1369_v11  ;;  %v1391_v6 = vld [vmem:[%s1910_s8] sm:$0xff] }
 0x12b   : > { %v1489_v10 = vpop.eup %1488 }
 0x12c   : > { %835 = vmatpush.bf16.msrb.mxu1 %v814_v3  ;;  %v812_v12 = vpack.c.bf16 %v1487_v9, %v1489_v10 }
 0x12e   : > { %1104 = vmatpush.bf16.msrb.mxu2 %v1368_v13 }
 0x130   : > { %836 = vmatpush.bf16.msrb.mxu1 %v813_v8 }
 0x132   : > { %1105 = vmatpush.bf16.msrb.mxu2 %v1367_v15 }
 0x134   : > { %837 = vmatpush.bf16.msrb.mxu1 %v812_v12 }
 0x136   : > { %1106 = vmatpush.bf16.msrb.mxu2 %v1366_v17 }
 0x138   : > { %838 = vmatpush.bf16.msrb.mxu1 %v811_v28  ;;  %v865_v28 = vpop.permute.xlu1 %864 }
 0x13a   : > { %1107 = vmatpush.bf16.msrb.mxu2 %v1365_v18 }
 0x13b   : > { %839 = vmatmul.bf16.vlgmr.msrb.gmra.mxu1 %v1387_v14  ;;  %v1084_v14 = vpop.permute.xlu0 %1083 }
 0x13e   : > { %1108 = vmatpush.bf16.msrb.mxu2 %v1364_v19 }
 0x140   : > { %v860_v32 = vpop.permute.xlu1 %859 }
 0x148   : > { %v994_v62 = vpop.permute.xlu1 %993 }
 0x14b   : > { %844 = vmatmul.bf16.gmra.mxu1 %v1388_v16 }
 0x1b8   : > { %v840_v20 = vpop.f32.mrf.mxu1 }
 0x1c0   : > { %v842_v21 = vpop.f32.mrf.mxu1 }
 0x1c1   : > { %v850_v22 = vpack.c.bf16 %v842_v21, %v840_v20  ;;  %v1094_v21 = vpop.permute.xlu2 %1093 }
 0x1c3   : > { %928 = vmatmul.bf16.vlgmr.msra.gmra.mxu2 %v850_v22 }
 0x1c8   : > { %v845_v23 = vpop.f32.mrf.mxu1 }
 0x1d0   : > { %v847_v24 = vpop.f32.mrf.mxu1 }
 0x1d1   : > { %v851_v25 = vpack.c.bf16 %v847_v24, %v845_v23 }
 0x1d3   : > { %933 = vmatmul.bf16.gmra.mxu2 %v851_v25  ;;  %v1099_v25 = vpop.permute.xlu0 %1098 }
 0x246   : > { %v929_v26 = vpop.f32.mrf.mxu2 }
 0x247   : > { %v930_v37 = vadd.f32 %v929_v26, %v855_v36 }
 0x249   : > { %v939_v42 = vmax.f32 %v930_v37, 0.0 }
 0x24e   : > { %v931_v27 = vpop.f32.mrf.mxu2 }
 0x24f   : > { %v932_v34 = vadd.f32 %v931_v27, %v860_v32 }
 0x251   : > { %v940_v40 = vmax.f32 %v932_v34, 0.0 }
 0x253   : > { %v951_v43 = vpack.c.bf16 %v940_v40, %v939_v42 }
 0x256   : > { %v934_v29 = vpop.f32.mrf.mxu2 }
 0x257   : > { %v935_v31 = vadd.f32 %v934_v29, %v865_v28 }
 0x259   : > { %v941_v38 = vmax.f32 %v935_v31, 0.0 }
 0x25e   : > { %v936_v33 = vpop.f32.mrf.mxu2 }
 0x25f   : > { %v937_v35 = vadd.f32 %v936_v33, %v870_v30 }
 0x261   : > { %v942_v39 = vmax.f32 %v937_v35, 0.0 }
 0x263   : > { %v952_v41 = vpack.c.bf16 %v942_v39, %v941_v38 }
 0x265   : > { %976 = vmatpush.bf16.msrb.mxu3 %v952_v41 }
 0x269   : > { %977 = vmatpush.bf16.msrb.mxu3 %v951_v43 }
 0x26c   : > { %1347 = vmatmul.msk.bf16.vlgmr.msrb.gmra.mxu3 %vm963_vm3, %v1389_v44 }
 0x26d   : > { %1011 = vmatpush.bf16.msra.mxu3 %v1826_v5 }
 0x271   : > { %1012 = vmatpush.bf16.msra.mxu3 %v1830_v7  ;;  %v1392_v7 = vld [vmem:[%s1910_s8 + $0x8] sm:$0xff] }
 0x275   : > { %1013 = vmatpush.bf16.msra.mxu3 %v1369_v11 }
 0x279   : > { %1014 = vmatpush.bf16.msra.mxu3 %v1368_v13 }
 0x27c   : > { %1348 = vmatmul.msk.bf16.gmra.mxu3 %vm963_vm3, %v1390_v45 }
 0x27d   : > { %1015 = vmatpush.bf16.msra.mxu3 %v1367_v15 }
 0x281   : > { %1016 = vmatpush.bf16.msra.mxu3 %v1366_v17  ;;  %v1089_v17 = vpop.permute.xlu1 %1088 }
 0x285   : > { %1017 = vmatpush.bf16.msra.mxu3 %v1365_v18 }
 0x289   : > { %1018 = vmatpush.bf16.msra.mxu3 %v1364_v19 }
 0x2ef   : > { %v979_v46 = vpop.f32.mrf.mxu3 }
 0x2f7   : > { %v981_v47 = vpop.f32.mrf.mxu3 }
 0x2f8   : > { %v989_v48 = vpack.c.bf16 %v981_v47, %v979_v46 }
 0x2fa   : > { %1019 = vmatmul.bf16.vlgmr.msra.gmra.mxu3 %v989_v48 }
 0x2ff   : > { %v984_v49 = vpop.f32.mrf.mxu3 }
 0x307   : > { %v986_v50 = vpop.f32.mrf.mxu3 }
 0x308   : > { %v990_v51 = vpack.c.bf16 %v986_v50, %v984_v49 }
 0x30a   : > { %1024 = vmatmul.bf16.gmra.mxu3 %v990_v51 }
 0x37d   : > { %v1020_v52 = vpop.f32.mrf.mxu3 }
 0x37e   : > { %v1021_v63 = vadd.f32 %v1020_v52, %v994_v62 }
 0x380   : > { %v1030_v4 = vmax.f32 %v1021_v63, 0.0 }
 0x385   : > { %v1022_v53 = vpop.f32.mrf.mxu3 }
 0x386   : > { %v1023_v60 = vadd.f32 %v1022_v53, %v999_v58 }
 0x388   : > { %v1031_v2 = vmax.f32 %v1023_v60, 0.0 }
 0x38a   : > { %v1042_v5 = vpack.c.bf16 %v1031_v2, %v1030_v4 }
 0x38d   : > { %v1025_v55 = vpop.f32.mrf.mxu3 }
 0x38e   : > { %v1026_v57 = vadd.f32 %v1025_v55, %v1004_v54 }
 0x390   : > { %v1032_v0 = vmax.f32 %v1026_v57, 0.0 }
 0x395   : > { %v1027_v59 = vpop.f32.mrf.mxu3 }
 0x396   : > { %v1028_v61 = vadd.f32 %v1027_v59, %v1009_v56 }
 0x398   : > { %v1033_v1 = vmax.f32 %v1028_v61, 0.0 }
 0x39a   : > { %v1043_v3 = vpack.c.bf16 %v1033_v1, %v1032_v0 }
 0x39c   : > { %1066 = vmatpush.bf16.msra.mxu1 %v1043_v3 }
 0x3a0   : > { %1067 = vmatpush.bf16.msra.mxu1 %v1042_v5 }
 0x3a3   : > { %1357 = vmatmul.msk.bf16.vlgmr.msra.gmra.mxu1 %vm963_vm3, %v1391_v6 }
 0x3b3   : > { %1358 = vmatmul.msk.bf16.gmra.mxu1 %vm963_vm3, %v1392_v7 }
 0x420   : > { %v1069_v8 = vpop.f32.mrf.mxu1 }
 0x428   : > { %v1071_v9 = vpop.f32.mrf.mxu1 }
 0x429   : > { %v1079_v10 = vpack.c.bf16 %v1071_v9, %v1069_v8 }
 0x42b   : > { %1109 = vmatmul.bf16.vlgmr.msrb.gmra.mxu2 %v1079_v10 }
 0x430   : > { %v1074_v11 = vpop.f32.mrf.mxu1 }
 0x438   : > { %v1076_v12 = vpop.f32.mrf.mxu1 }
 0x439   : > { %v1080_v13 = vpack.c.bf16 %v1076_v12, %v1074_v11 }
 0x43b   : > { %1114 = vmatmul.bf16.gmra.mxu2 %v1080_v13 }
 0x4ae   : > { %v1110_v15 = vpop.f32.mrf.mxu2 }
 0x4af   : > { %v1111_v16 = vadd.f32 %v1110_v15, %v1084_v14 }
 0x4b1   : > { %1490 = vtanh.f32 %v1111_v16 }
 0x4b6   : > { %v1112_v18 = vpop.f32.mrf.mxu2 }
 0x4b7   : > { %v1491_v19 = vpop.eup %1490  ;;  %v1113_v20 = vadd.f32 %v1112_v18, %v1089_v17 }
 0x4b8   : > { %1124 = vst [vmem:[%s471_s27] sm:$0xff] %v1491_v19 }
 0x4b9   : > { %1492 = vtanh.f32 %v1113_v20 }
 0x4be   : > { %v1115_v22 = vpop.f32.mrf.mxu2 }
 0x4bf   : > { %v1493_v23 = vpop.eup %1492  ;;  %v1116_v24 = vadd.f32 %v1115_v22, %v1094_v21 }
 0x4c0   : > { %1125 = vst [vmem:[%s471_s27 + $0x8] sm:$0xff] %v1493_v23 }
 0x4c1   : > { %1494 = vtanh.f32 %v1116_v24 }
 0x4c6   : > { %v1117_v26 = vpop.f32.mrf.mxu2 }
 0x4c7   : > { %v1495_v27 = vpop.eup %1494  ;;  %v1118_v28 = vadd.f32 %v1117_v26, %v1099_v25 }
 0x4c8   : > { %1126 = vst [vmem:[%s471_s27 + $0x10] sm:$0xff] %v1495_v27 }
 0x4c9   : > { %1496 = vtanh.f32 %v1118_v28 }
 0x4cf   : > { %v1497_v29 = vpop.eup %1496 }
 0x4d0   : > { %1127 = vst [vmem:[%s471_s27 + $0x18] sm:$0xff] %v1497_v29 }
 0x4d1   : > { %1525 = shalt.err (!%p1522_p7)
}
 0x4d2   : > { %s1564_s12 = smov 128   ;;  %s1565_s27 = smov 256  }
 0x4d3   : > { %s1566_s30 = smov 8  }
 0x4d4   : > { %1411 = dma.vmem_to_hbm [thread:$0]  (%p1661_p6), %s1141_s11, 512, %s1143_s18, %s1129_s20, %s1564_s12, %s1565_s27, %s1566_s30  }
 0x4d5 PF: > { %s1157_s0 = sand.u32 1, %s1548_s13   ;;  %p1414_p10 = pnand %p1225_p9, %p1665_p8 }
 0x4d6   : > { %s1158_s21 = scalar_lea.sflag [#allocation4], %s1157_s0 }
 0x4d7   : > { %p1415_p11 = pneg %p1414_p10 }
 0x4d9   : > { %1543 = dma.done.wait (%p1415_p11), %s1158_s21, 512  }
 0x4da   : > { %1545 = vsyncadd (%p1415_p11), %s1158_s21, 4294966784  ;;  %p20_p12 = scmp.ge.s32.totalorder %s1647_s19, 4   ;;  %s1917_s13 = smov %s1552_s14 }
 0x4db   : > { %s1918_s14 = smov %s1556_s15  ;;  %s1919_s15 = smov %s1659_s22 }
 0x4dc   : > { %s1920_s16 = smov %s1647_s19  ;;  %22 = sbr.rel (!%p20_p12) target bundleno = 5 (0x5), region = 144 }
 0x4e1   :  { %1164 = vsyncpa [#allocation4], 1 }
 0x4e2   :  { %1166 = vsyncpa [#allocation4 + $0x1], 1 }

</bundles_post_ra>
